<compile_context>
chip_gen: v7x
topology: tpu7x:2x2x1
jax: 0.10.0
libtpu: 0.0.40
codegen_flags: <defaults>
</compile_context>

<pallas_src>
import functools

import jax
import jax.numpy as jnp
import numpy as np
from jax.experimental import pallas as pl
from jax.experimental.pallas import tpu as pltpu


# ----------------------------------------------------------------------------
# Kernel
# ----------------------------------------------------------------------------
def _depth_metrics_kernel(*refs, focal, baseline, flow_scaling, mask_output,
                          groups_per_step):
    if mask_output:
        disp_ref, gt_ref, ev_ref, out_ref = refs
    else:
        disp_ref, gt_ref, out_ref = refs
        ev_ref = None

    inner = pl.program_id(2)                 # chunk index within this slab

    G = groups_per_step
    cr8 = disp_ref.shape[0]                  # (8,128) groups in this chunk
    n_steps = cr8 // G                       # exact by construction

    fb = float(focal) * float(baseline)
    inv_fb = 1.0 / fb
    t1, t2, t3 = 1.25, 1.25 ** 2, 1.25 ** 3

    zero = jnp.zeros((8, 128), jnp.float32)
    init = (zero,) * 7                       # cnt, abs, log, log2, d1, d2, d3

    def step(s, accs):
        cnt_a, abs_a, log_a, log2_a, d1_a, d2_a, d3_a = accs
        off = pl.multiple_of(s * G, G)

        disp = disp_ref[pl.ds(off, G), :, :].astype(jnp.float32)   # (G,8,128)
        gt = gt_ref[pl.ds(off, G), :, :].astype(jnp.float32)

        x = disp * flow_scaling + 1e-9
        # mask = isfinite(gt) & (gt > 0) [& (event_cnt.sum(ch) > 0)]
        mask = jnp.isfinite(gt) & (gt > 0.0)
        if mask_output:
            ev = (ev_ref[0, pl.ds(off, G), :, :].astype(jnp.float32)
                  + ev_ref[1, pl.ds(off, G), :, :].astype(jnp.float32))
            mask = mask & (ev > 0.0)
        maskf = mask.astype(jnp.float32)

        # Single reciprocal + single log per pixel:
        #   depth = fb / x ; r = depth/gt = fb*inv ; gt/depth = (gt*x)*inv_fb
        inv = 1.0 / (x * gt)                                   # EUP recip
        r = fb * inv
        abs_rel = jnp.where(mask, jnp.abs(r - 1.0), 0.0)       # |depth-gt|/gt
        log_r = jnp.where(mask, jnp.log(r), 0.0)               # EUP log
        # Same semantics as the reference: error[~mask] = inf, then < thresh.
        ratio = jnp.where(mask, jnp.maximum(r, (gt * x) * inv_fb), jnp.inf)

        d1 = (ratio < t1).astype(jnp.float32)
        d2 = (ratio < t2).astype(jnp.float32)
        d3 = (ratio < t3).astype(jnp.float32)

        # Leading-axis (non-layout) reductions = pure VPU vreg adds.
        return (cnt_a + jnp.sum(maskf, axis=0),
                abs_a + jnp.sum(abs_rel, axis=0),
                log_a + jnp.sum(log_r, axis=0),
                log2_a + jnp.sum(log_r * log_r, axis=0),
                d1_a + jnp.sum(d1, axis=0),
                d2_a + jnp.sum(d2, axis=0),
                d3_a + jnp.sum(d3, axis=0))

    unroll = True if n_steps <= 16 else False
    accs = jax.lax.fori_loop(0, n_steps, step, init, unroll=unroll)

    # Per-plane accumulation into the resident (7,8,128) output block.
    @pl.when(inner == 0)
    def _():
        for k in range(7):
            out_ref[k, :, :] = accs[k]

    @pl.when(inner > 0)
    def _():
        for k in range(7):
            out_ref[k, :, :] = out_ref[k, :, :] + accs[k]


# ----------------------------------------------------------------------------
# Wrapper
# ----------------------------------------------------------------------------
def _default_chunk_groups():
    # ~1 MiB per input per DMA buffer; 2 MiB on 128-MiB-VMEM parts (v5e/v6e).
    try:
        if pltpu.get_tpu_info().vmem_capacity_bytes >= 100 * 1024 * 1024:
            return 512
    except Exception:
        pass
    return 256


def _pick_chunking(P, B, chunk_groups, groups_per_step):
    """Balanced chunking of P pixels into (outer, inner) chunks of (8,128) groups."""
    R8 = pl.cdiv(P, 1024)                        # number of (8,128) groups
    n_outer = 2 if (B % 2 == 1) else 1           # feed both v7x TCs at odd B
    cr8_cap = max(1, min(chunk_groups, R8))
    n_chunks = pl.cdiv(R8, cr8_cap)
    n_chunks = pl.cdiv(n_chunks, n_outer) * n_outer
    cr8 = pl.cdiv(R8, n_chunks)                  # balanced chunk size
    gps = max(1, min(groups_per_step, cr8))
    cr8 = pl.cdiv(cr8, gps) * gps                # whole inner steps per chunk
    R8_pad = cr8 * n_chunks
    return R8_pad, cr8, gps, n_outer, n_chunks // n_outer


def depth_benchmark_forward(disp, event_cnt, gt_depth, *,
                            focal=199.0, baseline=10.0, flow_scaling=1.0,
                            mask_output=True, chunk_groups=None,
                            groups_per_step=8):
    """Reproduces Depth_Benchmark.event_association(...) + forward().

    disp:      [B, 1, H, W]  disparity fed to event_association
    event_cnt: [B, 2, H, W]  (only streamed to the kernel when mask_output)
    gt_depth:  [B, H, W]
    Returns dict of scalar metrics.
    """
    if chunk_groups is None:
        chunk_groups = _default_chunk_groups()

    B = disp.shape[0]
    H, W = disp.shape[-2], disp.shape[-1]
    P = H * W

    R8_pad, cr8, gps, n_outer, n_inner = _pick_chunking(
        P, B, chunk_groups, groups_per_step)
    P_pad = R8_pad * 1024
    pad = P_pad - P

    # No dtype copy in the wrapper; the kernel casts at load.  Padded pixels
    # have gt == 0 so the in-kernel validity mask drops them.
    def prep(x, lead):
        x = x.reshape((B,) + lead + (P,))
        if pad:
            x = jnp.pad(x, [(0, 0)] * (1 + len(lead)) + [(0, pad)])
        return x.reshape((B,) + lead + (R8_pad, 8, 128))

    disp_r = prep(disp, ())
    gt_r = prep(gt_depth, ())

    def px_map(b, o, i, n_inner=n_inner):
        return (b, o * n_inner + i, 0, 0)

    in_specs = [
        pl.BlockSpec((None, cr8, 8, 128), px_map),
        pl.BlockSpec((None, cr8, 8, 128), px_map),
    ]
    operands = [disp_r, gt_r]
    if mask_output:
        # TODO(synk): upstream could store a single narrow validity plane
        # instead of 2 f32 event-count planes to halve masked-mode HBM bytes.
        ev_r = prep(event_cnt, (2,))
        in_specs.append(pl.BlockSpec(
            (None, 2, cr8, 8, 128),
            lambda b, o, i, n_inner=n_inner: (b, 0, o * n_inner + i, 0, 0)))
        operands.append(ev_r)

    kernel = functools.partial(
        _depth_metrics_kernel,
        focal=float(focal), baseline=float(baseline),
        flow_scaling=float(flow_scaling), mask_output=mask_output,
        groups_per_step=gps)

    acc = pl.pallas_call(
        kernel,
        out_shape=jax.ShapeDtypeStruct((B, n_outer, 7, 8, 128), jnp.float32),
        grid=(B, n_outer, n_inner),
        in_specs=in_specs,
        out_specs=pl.BlockSpec((None, None, 7, 8, 128),
                               lambda b, o, i: (b, o, 0, 0, 0)),
        compiler_params=pltpu.CompilerParams(
            dimension_semantics=("parallel", "parallel", "arbitrary"),
            # 48 MiB: comfortably holds double-buffered <=512-group chunks and
            # stays under v7x's 64 MiB physical VMEM.
            vmem_limit_bytes=48 * 1024 * 1024),
    )(*operands)

    # Tiny epilogue in plain JAX: fold outer slabs + (8,128) lane partials.
    vals = jnp.sum(acc, axis=(1, 3, 4))          # (B, 7)
    cnt = vals[:, 0]
    s_abs, s_log, s_log2 = vals[:, 1], vals[:, 2], vals[:, 3]
    d1, d2, d3 = vals[:, 4], vals[:, 5], vals[:, 6]

    return {
        "Abs_Relative_Error": jnp.mean(s_abs / cnt),
        "Log_RMSE": jnp.mean(jnp.sqrt(s_log2 / cnt)),
        "SILog": jnp.mean(s_log2 / cnt - (s_log ** 2) / (cnt ** 2)),
        "Delta_1": jnp.mean(d1 / cnt),
        "Delta_2": jnp.mean(d2 / cnt),
        "Delta_3": jnp.mean(d3 / cnt),
    }


# ----------------------------------------------------------------------------
# Pure-JAX reference (mirrors the PyTorch forward) for correctness checking.
# ----------------------------------------------------------------------------
def _reference(disp, event_cnt, gt, *, focal, baseline, flow_scaling,
               mask_output):
    depth = focal / (disp * flow_scaling + 1e-9) * baseline      # [B,1,H,W]
    gtm = gt[:, None]
    mask = jnp.isfinite(gtm) & (gtm > 0)
    if mask_output:
        mask = mask & (event_cnt.sum(axis=1, keepdims=True) > 0)
    cnt = mask.sum(axis=(1, 2, 3)).astype(jnp.float32)
    abs_e = jnp.where(mask, jnp.abs(depth - gtm) / gtm, 0.0)
    log_e = jnp.where(mask, jnp.log(depth) - jnp.log(gtm), 0.0)
    ratio = jnp.where(mask, jnp.maximum(depth / gtm, gtm / depth), jnp.inf)
    out = {
        "Abs_Relative_Error": (abs_e.sum(axis=(1, 2, 3)) / cnt).mean(),
        "Log_RMSE": jnp.sqrt((log_e ** 2).sum(axis=(1, 2, 3)) / cnt).mean(),
        "SILog": ((log_e ** 2).sum(axis=(1, 2, 3)) / cnt
                  - log_e.sum(axis=(1, 2, 3)) ** 2 / cnt ** 2).mean(),
    }
    for k, t in (("Delta_1", 1.25), ("Delta_2", 1.25 ** 2), ("Delta_3", 1.25 ** 3)):
        out[k] = ((ratio < t).sum(axis=(1, 2, 3)) / cnt).mean()
    return out


if __name__ == "__main__":
    key = jax.random.PRNGKey(0)
    k1, k2, k3, k4 = jax.random.split(key, 4)

    B, H, W = 2, 16, 16
    # Positive disparity so depth / log(depth) are well defined on masked pixels.
    disp = jax.random.uniform(k1, (B, 1, H, W), jnp.float32, 0.5, 2.0)
    # Sparse event counts -> exercises the mask_output branch.
    event_cnt = (jax.random.uniform(k2, (B, 2, H, W)) > 0.5).astype(jnp.float32)
    # Ground-truth depth with some invalid (zero) pixels -> exercises gt > 0 mask.
    gt = jax.random.uniform(k3, (B, H, W), jnp.float32, 1.0, 100.0)
    gt = gt * (jax.random.uniform(k4, (B, H, W)) > 0.2).astype(jnp.float32)

    cfg = dict(focal=199.0, baseline=10.0, flow_scaling=1.0)

    cases = [
        ("masked", disp, event_cnt, gt, True),
        ("unmasked", disp, event_cnt, gt, False),
        # B=1 exercises the odd-batch outer-split (v7x megacore) path.
        ("b1_masked", disp[:1], event_cnt[:1], gt[:1], True),
    ]
    for name, d_, e_, g_, m_ in cases:
        got = depth_benchmark_forward(d_, e_, g_, mask_output=m_, **cfg)
        got = jax.block_until_ready(got)
        ref = jax.block_until_ready(_reference(d_, e_, g_, mask_output=m_, **cfg))
        for key_name in ref:
            np.testing.assert_allclose(
                np.asarray(got[key_name]), np.asarray(ref[key_name]),
                rtol=2e-3, atol=1e-5,
                err_msg=f"{name}:{key_name}")

    print("KERNEL_OK")
</pallas_src>

<mosaic_0001>
module attributes {stable_mosaic.version = 11 : i64} {
  func.func @_depth_metrics_kernel(%arg0: i32, %arg1: i32, %arg2: i32, %arg3: memref<1x1x8x128xf32, #tpu.memory_space<vmem>>, %arg4: memref<1x1x8x128xf32, #tpu.memory_space<vmem>>, %arg5: memref<1x2x1x8x128xf32, #tpu.memory_space<vmem>>, %arg6: memref<1x1x7x8x128xf32, #tpu.memory_space<vmem>>) attributes {dimension_semantics = [#tpu.dimension_semantics<parallel>, #tpu.dimension_semantics<parallel>, #tpu.dimension_semantics<arbitrary>], iteration_bounds = array<i64: 2, 1, 1>, scalar_prefetch = 0 : i64, scratch_operands = 0 : i64, tpu.core_type = #tpu.core_type<tc>, window_params = [{transform_indices = @transform_0, window_bounds = array<i64: 1, 1, 8, 128>}, {transform_indices = @transform_1, window_bounds = array<i64: 1, 1, 8, 128>}, {transform_indices = @transform_2, window_bounds = array<i64: 1, 2, 1, 8, 128>}, {transform_indices = @transform_3, window_bounds = array<i64: 1, 1, 7, 8, 128>}]} {
    %cst = arith.constant 0.000000e+00 : f32
    %0 = vector.broadcast %cst : f32 to vector<8x128xf32>
    %c0_i32 = arith.constant 0 : i32
    %c1_i32 = arith.constant 1 : i32
    %1 = arith.muli %c0_i32, %c1_i32 : i32
    %2 = tpu.assume_multiple %1, 1 : i32
    %c0 = arith.constant 0 : index
    %3 = arith.index_cast %2 : i32 to index
    %c0_0 = arith.constant 0 : index
    %c0_1 = arith.constant 0 : index
    %4 = vector.load %arg3[%c0, %3, %c0_0, %c0_1] : memref<1x1x8x128xf32, #tpu.memory_space<vmem>>, vector<1x1x8x128xf32>
    %5 = vector.shape_cast %4 : vector<1x1x8x128xf32> to vector<1x8x128xf32>
    %c0_2 = arith.constant 0 : index
    %6 = arith.index_cast %2 : i32 to index
    %c0_3 = arith.constant 0 : index
    %c0_4 = arith.constant 0 : index
    %7 = vector.load %arg4[%c0_2, %6, %c0_3, %c0_4] : memref<1x1x8x128xf32, #tpu.memory_space<vmem>>, vector<1x1x8x128xf32>
    %8 = vector.shape_cast %7 : vector<1x1x8x128xf32> to vector<1x8x128xf32>
    %cst_5 = arith.constant 1.000000e+00 : f32
    %9 = vector.broadcast %cst_5 : f32 to vector<1x8x128xf32>
    %10 = arith.mulf %5, %9 : vector<1x8x128xf32>
    %cst_6 = arith.constant 9.99999971E-10 : f32
    %11 = vector.broadcast %cst_6 : f32 to vector<1x8x128xf32>
    %12 = arith.addf %10, %11 : vector<1x8x128xf32>
    %13 = tpu.weird %8 : vector<1x8x128xf32> -> vector<1x8x128xi1>
    %cst_7 = arith.constant dense<true> : vector<1x8x128xi1>
    %14 = arith.xori %13, %cst_7 : vector<1x8x128xi1>
    %cst_8 = arith.constant 0.000000e+00 : f32
    %15 = vector.broadcast %cst_8 : f32 to vector<1x8x128xf32>
    %16 = arith.cmpf ogt, %8, %15 : vector<1x8x128xf32>
    %17 = arith.andi %14, %16 : vector<1x8x128xi1>
    %c0_9 = arith.constant 0 : index
    %c0_10 = arith.constant 0 : index
    %18 = arith.index_cast %2 : i32 to index
    %c0_11 = arith.constant 0 : index
    %c0_12 = arith.constant 0 : index
    %19 = vector.load %arg5[%c0_9, %c0_10, %18, %c0_11, %c0_12] : memref<1x2x1x8x128xf32, #tpu.memory_space<vmem>>, vector<1x1x1x8x128xf32>
    %20 = vector.shape_cast %19 : vector<1x1x1x8x128xf32> to vector<1x8x128xf32>
    %c0_13 = arith.constant 0 : index
    %c1 = arith.constant 1 : index
    %21 = arith.index_cast %2 : i32 to index
    %c0_14 = arith.constant 0 : index
    %c0_15 = arith.constant 0 : index
    %22 = vector.load %arg5[%c0_13, %c1, %21, %c0_14, %c0_15] : memref<1x2x1x8x128xf32, #tpu.memory_space<vmem>>, vector<1x1x1x8x128xf32>
    %23 = vector.shape_cast %22 : vector<1x1x1x8x128xf32> to vector<1x8x128xf32>
    %24 = arith.addf %20, %23 : vector<1x8x128xf32>
    %cst_16 = arith.constant 0.000000e+00 : f32
    %25 = vector.broadcast %cst_16 : f32 to vector<1x8x128xf32>
    %26 = arith.cmpf ogt, %24, %25 : vector<1x8x128xf32>
    %27 = arith.andi %17, %26 : vector<1x8x128xi1>
    %28 = arith.extui %27 : vector<1x8x128xi1> to vector<1x8x128xi32>
    %29 = arith.sitofp %28 : vector<1x8x128xi32> to vector<1x8x128xf32>
    %30 = arith.mulf %12, %8 : vector<1x8x128xf32>
    %cst_17 = arith.constant 1.000000e+00 : f32
    %31 = vector.broadcast %cst_17 : f32 to vector<1x8x128xf32>
    %32 = arith.divf %31, %30 : vector<1x8x128xf32>
    %cst_18 = arith.constant 1.990000e+03 : f32
    %33 = vector.broadcast %cst_18 : f32 to vector<1x8x128xf32>
    %34 = arith.mulf %33, %32 : vector<1x8x128xf32>
    %cst_19 = arith.constant 1.000000e+00 : f32
    %35 = vector.broadcast %cst_19 : f32 to vector<1x8x128xf32>
    %36 = arith.subf %34, %35 : vector<1x8x128xf32>
    %37 = math.absf %36 : vector<1x8x128xf32>
    %cst_20 = arith.constant 0.000000e+00 : f32
    %38 = vector.broadcast %cst_20 : f32 to vector<1x8x128xf32>
    %39 = arith.select %27, %37, %38 : vector<1x8x128xi1>, vector<1x8x128xf32>
    %40 = math.log %34 : vector<1x8x128xf32>
    %cst_21 = arith.constant 0.000000e+00 : f32
    %41 = vector.broadcast %cst_21 : f32 to vector<1x8x128xf32>
    %42 = arith.select %27, %40, %41 : vector<1x8x128xi1>, vector<1x8x128xf32>
    %43 = arith.mulf %8, %12 : vector<1x8x128xf32>
    %cst_22 = arith.constant 5.02512557E-4 : f32
    %44 = vector.broadcast %cst_22 : f32 to vector<1x8x128xf32>
    %45 = arith.mulf %43, %44 : vector<1x8x128xf32>
    %46 = arith.maximumf %34, %45 : vector<1x8x128xf32>
    %cst_23 = arith.constant 0x7F800000 : f32
    %47 = vector.broadcast %cst_23 : f32 to vector<1x8x128xf32>
    %48 = arith.select %27, %46, %47 : vector<1x8x128xi1>, vector<1x8x128xf32>
    %cst_24 = arith.constant 1.250000e+00 : f32
    %49 = vector.broadcast %cst_24 : f32 to vector<1x8x128xf32>
    %50 = arith.cmpf olt, %48, %49 : vector<1x8x128xf32>
    %51 = arith.extui %50 : vector<1x8x128xi1> to vector<1x8x128xi32>
    %52 = arith.sitofp %51 : vector<1x8x128xi32> to vector<1x8x128xf32>
    %cst_25 = arith.constant 1.562500e+00 : f32
    %53 = vector.broadcast %cst_25 : f32 to vector<1x8x128xf32>
    %54 = arith.cmpf olt, %48, %53 : vector<1x8x128xf32>
    %55 = arith.extui %54 : vector<1x8x128xi1> to vector<1x8x128xi32>
    %56 = arith.sitofp %55 : vector<1x8x128xi32> to vector<1x8x128xf32>
    %cst_26 = arith.constant 1.953125 : f32
    %57 = vector.broadcast %cst_26 : f32 to vector<1x8x128xf32>
    %58 = arith.cmpf olt, %48, %57 : vector<1x8x128xf32>
    %59 = arith.extui %58 : vector<1x8x128xi1> to vector<1x8x128xi32>
    %60 = arith.sitofp %59 : vector<1x8x128xi32> to vector<1x8x128xf32>
    %cst_27 = arith.constant dense<0.000000e+00> : vector<8x128xf32>
    %61 = vector.multi_reduction <add>, %29, %cst_27 [0] : vector<1x8x128xf32> to vector<8x128xf32>
    %62 = arith.addf %0, %61 : vector<8x128xf32>
    %cst_28 = arith.constant dense<0.000000e+00> : vector<8x128xf32>
    %63 = vector.multi_reduction <add>, %39, %cst_28 [0] : vector<1x8x128xf32> to vector<8x128xf32>
    %64 = arith.addf %0, %63 : vector<8x128xf32>
    %cst_29 = arith.constant dense<0.000000e+00> : vector<8x128xf32>
    %65 = vector.multi_reduction <add>, %42, %cst_29 [0] : vector<1x8x128xf32> to vector<8x128xf32>
    %66 = arith.addf %0, %65 : vector<8x128xf32>
    %67 = arith.mulf %42, %42 : vector<1x8x128xf32>
    %cst_30 = arith.constant dense<0.000000e+00> : vector<8x128xf32>
    %68 = vector.multi_reduction <add>, %67, %cst_30 [0] : vector<1x8x128xf32> to vector<8x128xf32>
    %69 = arith.addf %0, %68 : vector<8x128xf32>
    %cst_31 = arith.constant dense<0.000000e+00> : vector<8x128xf32>
    %70 = vector.multi_reduction <add>, %52, %cst_31 [0] : vector<1x8x128xf32> to vector<8x128xf32>
    %71 = arith.addf %0, %70 : vector<8x128xf32>
    %cst_32 = arith.constant dense<0.000000e+00> : vector<8x128xf32>
    %72 = vector.multi_reduction <add>, %56, %cst_32 [0] : vector<1x8x128xf32> to vector<8x128xf32>
    %73 = arith.addf %0, %72 : vector<8x128xf32>
    %cst_33 = arith.constant dense<0.000000e+00> : vector<8x128xf32>
    %74 = vector.multi_reduction <add>, %60, %cst_33 [0] : vector<1x8x128xf32> to vector<8x128xf32>
    %75 = arith.addf %0, %74 : vector<8x128xf32>
    %c1_i32_34 = arith.constant 1 : i32
    %c0_i32_35 = arith.constant 0 : i32
    %76 = arith.cmpi eq, %arg2, %c0_i32_35 : i32
    %77 = arith.extui %76 : i1 to i32
    %c0_i32_36 = arith.constant 0 : i32
    %78 = arith.cmpi ne, %77, %c0_i32_36 : i32
    scf.if %78 {
      %c0_39 = arith.constant 0 : index
      %c0_40 = arith.constant 0 : index
      %c0_41 = arith.constant 0 : index
      %c0_42 = arith.constant 0 : index
      %c0_43 = arith.constant 0 : index
      %82 = vector.load %arg6[%c0_39, %c0_40, %c0_41, %c0_42, %c0_43] : memref<1x1x7x8x128xf32, #tpu.memory_space<vmem>>, vector<1x1x1x8x128xf32>
      %83 = vector.shape_cast %82 : vector<1x1x1x8x128xf32> to vector<8x128xf32>
      %84 = vector.shape_cast %62 : vector<8x128xf32> to vector<1x1x1x8x128xf32>
      tpu.vector_store %arg6[%c0_39, %c0_40, %c0_41, %c0_42, %c0_43], %84 {strides = array<i32>} : memref<1x1x7x8x128xf32, #tpu.memory_space<vmem>>, vector<1x1x1x8x128xf32>,
      %c0_44 = arith.constant 0 : index
      %c0_45 = arith.constant 0 : index
      %c1_46 = arith.constant 1 : index
      %c0_47 = arith.constant 0 : index
      %c0_48 = arith.constant 0 : index
      %85 = vector.load %arg6[%c0_44, %c0_45, %c1_46, %c0_47, %c0_48] : memref<1x1x7x8x128xf32, #tpu.memory_space<vmem>>, vector<1x1x1x8x128xf32>
      %86 = vector.shape_cast %85 : vector<1x1x1x8x128xf32> to vector<8x128xf32>
      %87 = vector.shape_cast %64 : vector<8x128xf32> to vector<1x1x1x8x128xf32>
      tpu.vector_store %arg6[%c0_44, %c0_45, %c1_46, %c0_47, %c0_48], %87 {strides = array<i32>} : memref<1x1x7x8x128xf32, #tpu.memory_space<vmem>>, vector<1x1x1x8x128xf32>,
      %c0_49 = arith.constant 0 : index
      %c0_50 = arith.constant 0 : index
      %c2 = arith.constant 2 : index
      %c0_51 = arith.constant 0 : index
      %c0_52 = arith.constant 0 : index
      %88 = vector.load %arg6[%c0_49, %c0_50, %c2, %c0_51, %c0_52] : memref<1x1x7x8x128xf32, #tpu.memory_space<vmem>>, vector<1x1x1x8x128xf32>
      %89 = vector.shape_cast %88 : vector<1x1x1x8x128xf32> to vector<8x128xf32>
      %90 = vector.shape_cast %66 : vector<8x128xf32> to vector<1x1x1x8x128xf32>
      tpu.vector_store %arg6[%c0_49, %c0_50, %c2, %c0_51, %c0_52], %90 {strides = array<i32>} : memref<1x1x7x8x128xf32, #tpu.memory_space<vmem>>, vector<1x1x1x8x128xf32>,
      %c0_53 = arith.constant 0 : index
      %c0_54 = arith.constant 0 : index
      %c3 = arith.constant 3 : index
      %c0_55 = arith.constant 0 : index
      %c0_56 = arith.constant 0 : index
      %91 = vector.load %arg6[%c0_53, %c0_54, %c3, %c0_55, %c0_56] : memref<1x1x7x8x128xf32, #tpu.memory_space<vmem>>, vector<1x1x1x8x128xf32>
      %92 = vector.shape_cast %91 : vector<1x1x1x8x128xf32> to vector<8x128xf32>
      %93 = vector.shape_cast %69 : vector<8x128xf32> to vector<1x1x1x8x128xf32>
      tpu.vector_store %arg6[%c0_53, %c0_54, %c3, %c0_55, %c0_56], %93 {strides = array<i32>} : memref<1x1x7x8x128xf32, #tpu.memory_space<vmem>>, vector<1x1x1x8x128xf32>,
      %c0_57 = arith.constant 0 : index
      %c0_58 = arith.constant 0 : index
      %c4 = arith.constant 4 : index
      %c0_59 = arith.constant 0 : index
      %c0_60 = arith.constant 0 : index
      %94 = vector.load %arg6[%c0_57, %c0_58, %c4, %c0_59, %c0_60] : memref<1x1x7x8x128xf32, #tpu.memory_space<vmem>>, vector<1x1x1x8x128xf32>
      %95 = vector.shape_cast %94 : vector<1x1x1x8x128xf32> to vector<8x128xf32>
      %96 = vector.shape_cast %71 : vector<8x128xf32> to vector<1x1x1x8x128xf32>
      tpu.vector_store %arg6[%c0_57, %c0_58, %c4, %c0_59, %c0_60], %96 {strides = array<i32>} : memref<1x1x7x8x128xf32, #tpu.memory_space<vmem>>, vector<1x1x1x8x128xf32>,
      %c0_61 = arith.constant 0 : index
      %c0_62 = arith.constant 0 : index
      %c5 = arith.constant 5 : index
      %c0_63 = arith.constant 0 : index
      %c0_64 = arith.constant 0 : index
      %97 = vector.load %arg6[%c0_61, %c0_62, %c5, %c0_63, %c0_64] : memref<1x1x7x8x128xf32, #tpu.memory_space<vmem>>, vector<1x1x1x8x128xf32>
      %98 = vector.shape_cast %97 : vector<1x1x1x8x128xf32> to vector<8x128xf32>
      %99 = vector.shape_cast %73 : vector<8x128xf32> to vector<1x1x1x8x128xf32>
      tpu.vector_store %arg6[%c0_61, %c0_62, %c5, %c0_63, %c0_64], %99 {strides = array<i32>} : memref<1x1x7x8x128xf32, #tpu.memory_space<vmem>>, vector<1x1x1x8x128xf32>,
      %c0_65 = arith.constant 0 : index
      %c0_66 = arith.constant 0 : index
      %c6 = arith.constant 6 : index
      %c0_67 = arith.constant 0 : index
      %c0_68 = arith.constant 0 : index
      %100 = vector.load %arg6[%c0_65, %c0_66, %c6, %c0_67, %c0_68] : memref<1x1x7x8x128xf32, #tpu.memory_space<vmem>>, vector<1x1x1x8x128xf32>
      %101 = vector.shape_cast %100 : vector<1x1x1x8x128xf32> to vector<8x128xf32>
      %102 = vector.shape_cast %75 : vector<8x128xf32> to vector<1x1x1x8x128xf32>
      tpu.vector_store %arg6[%c0_65, %c0_66, %c6, %c0_67, %c0_68], %102 {strides = array<i32>} : memref<1x1x7x8x128xf32, #tpu.memory_space<vmem>>, vector<1x1x1x8x128xf32>,
    } else {
    }
    %c0_i32_37 = arith.constant 0 : i32
    %79 = arith.cmpi sgt, %arg2, %c0_i32_37 : i32
    %80 = arith.extui %79 : i1 to i32
    %c0_i32_38 = arith.constant 0 : i32
    %81 = arith.cmpi ne, %80, %c0_i32_38 : i32
    scf.if %81 {
      %c0_39 = arith.constant 0 : index
      %c0_40 = arith.constant 0 : index
      %c0_41 = arith.constant 0 : index
      %c0_42 = arith.constant 0 : index
      %c0_43 = arith.constant 0 : index
      %82 = vector.load %arg6[%c0_39, %c0_40, %c0_41, %c0_42, %c0_43] : memref<1x1x7x8x128xf32, #tpu.memory_space<vmem>>, vector<1x1x1x8x128xf32>
      %83 = vector.shape_cast %82 : vector<1x1x1x8x128xf32> to vector<8x128xf32>
      %84 = arith.addf %83, %62 : vector<8x128xf32>
      %c0_44 = arith.constant 0 : index
      %c0_45 = arith.constant 0 : index
      %c0_46 = arith.constant 0 : index
      %c0_47 = arith.constant 0 : index
      %c0_48 = arith.constant 0 : index
      %85 = vector.load %arg6[%c0_44, %c0_45, %c0_46, %c0_47, %c0_48] : memref<1x1x7x8x128xf32, #tpu.memory_space<vmem>>, vector<1x1x1x8x128xf32>
      %86 = vector.shape_cast %85 : vector<1x1x1x8x128xf32> to vector<8x128xf32>
      %87 = vector.shape_cast %84 : vector<8x128xf32> to vector<1x1x1x8x128xf32>
      tpu.vector_store %arg6[%c0_44, %c0_45, %c0_46, %c0_47, %c0_48], %87 {strides = array<i32>} : memref<1x1x7x8x128xf32, #tpu.memory_space<vmem>>, vector<1x1x1x8x128xf32>,
      %c0_49 = arith.constant 0 : index
      %c0_50 = arith.constant 0 : index
      %c1_51 = arith.constant 1 : index
      %c0_52 = arith.constant 0 : index
      %c0_53 = arith.constant 0 : index
      %88 = vector.load %arg6[%c0_49, %c0_50, %c1_51, %c0_52, %c0_53] : memref<1x1x7x8x128xf32, #tpu.memory_space<vmem>>, vector<1x1x1x8x128xf32>
      %89 = vector.shape_cast %88 : vector<1x1x1x8x128xf32> to vector<8x128xf32>
      %90 = arith.addf %89, %64 : vector<8x128xf32>
      %c0_54 = arith.constant 0 : index
      %c0_55 = arith.constant 0 : index
      %c1_56 = arith.constant 1 : index
      %c0_57 = arith.constant 0 : index
      %c0_58 = arith.constant 0 : index
      %91 = vector.load %arg6[%c0_54, %c0_55, %c1_56, %c0_57, %c0_58] : memref<1x1x7x8x128xf32, #tpu.memory_space<vmem>>, vector<1x1x1x8x128xf32>
      %92 = vector.shape_cast %91 : vector<1x1x1x8x128xf32> to vector<8x128xf32>
      %93 = vector.shape_cast %90 : vector<8x128xf32> to vector<1x1x1x8x128xf32>
      tpu.vector_store %arg6[%c0_54, %c0_55, %c1_56, %c0_57, %c0_58], %93 {strides = array<i32>} : memref<1x1x7x8x128xf32, #tpu.memory_space<vmem>>, vector<1x1x1x8x128xf32>,
      %c0_59 = arith.constant 0 : index
      %c0_60 = arith.constant 0 : index
      %c2 = arith.constant 2 : index
      %c0_61 = arith.constant 0 : index
      %c0_62 = arith.constant 0 : index
      %94 = vector.load %arg6[%c0_59, %c0_60, %c2, %c0_61, %c0_62] : memref<1x1x7x8x128xf32, #tpu.memory_space<vmem>>, vector<1x1x1x8x128xf32>
      %95 = vector.shape_cast %94 : vector<1x1x1x8x128xf32> to vector<8x128xf32>
      %96 = arith.addf %95, %66 : vector<8x128xf32>
      %c0_63 = arith.constant 0 : index
      %c0_64 = arith.constant 0 : index
      %c2_65 = arith.constant 2 : index
      %c0_66 = arith.constant 0 : index
      %c0_67 = arith.constant 0 : index
      %97 = vector.load %arg6[%c0_63, %c0_64, %c2_65, %c0_66, %c0_67] : memref<1x1x7x8x128xf32, #tpu.memory_space<vmem>>, vector<1x1x1x8x128xf32>
      %98 = vector.shape_cast %97 : vector<1x1x1x8x128xf32> to vector<8x128xf32>
      %99 = vector.shape_cast %96 : vector<8x128xf32> to vector<1x1x1x8x128xf32>
      tpu.vector_store %arg6[%c0_63, %c0_64, %c2_65, %c0_66, %c0_67], %99 {strides = array<i32>} : memref<1x1x7x8x128xf32, #tpu.memory_space<vmem>>, vector<1x1x1x8x128xf32>,
      %c0_68 = arith.constant 0 : index
      %c0_69 = arith.constant 0 : index
      %c3 = arith.constant 3 : index
      %c0_70 = arith.constant 0 : index
      %c0_71 = arith.constant 0 : index
      %100 = vector.load %arg6[%c0_68, %c0_69, %c3, %c0_70, %c0_71] : memref<1x1x7x8x128xf32, #tpu.memory_space<vmem>>, vector<1x1x1x8x128xf32>
      %101 = vector.shape_cast %100 : vector<1x1x1x8x128xf32> to vector<8x128xf32>
      %102 = arith.addf %101, %69 : vector<8x128xf32>
      %c0_72 = arith.constant 0 : index
      %c0_73 = arith.constant 0 : index
      %c3_74 = arith.constant 3 : index
      %c0_75 = arith.constant 0 : index
      %c0_76 = arith.constant 0 : index
      %103 = vector.load %arg6[%c0_72, %c0_73, %c3_74, %c0_75, %c0_76] : memref<1x1x7x8x128xf32, #tpu.memory_space<vmem>>, vector<1x1x1x8x128xf32>
      %104 = vector.shape_cast %103 : vector<1x1x1x8x128xf32> to vector<8x128xf32>
      %105 = vector.shape_cast %102 : vector<8x128xf32> to vector<1x1x1x8x128xf32>
      tpu.vector_store %arg6[%c0_72, %c0_73, %c3_74, %c0_75, %c0_76], %105 {strides = array<i32>} : memref<1x1x7x8x128xf32, #tpu.memory_space<vmem>>, vector<1x1x1x8x128xf32>,
      %c0_77 = arith.constant 0 : index
      %c0_78 = arith.constant 0 : index
      %c4 = arith.constant 4 : index
      %c0_79 = arith.constant 0 : index
      %c0_80 = arith.constant 0 : index
      %106 = vector.load %arg6[%c0_77, %c0_78, %c4, %c0_79, %c0_80] : memref<1x1x7x8x128xf32, #tpu.memory_space<vmem>>, vector<1x1x1x8x128xf32>
      %107 = vector.shape_cast %106 : vector<1x1x1x8x128xf32> to vector<8x128xf32>
      %108 = arith.addf %107, %71 : vector<8x128xf32>
      %c0_81 = arith.constant 0 : index
      %c0_82 = arith.constant 0 : index
      %c4_83 = arith.constant 4 : index
      %c0_84 = arith.constant 0 : index
      %c0_85 = arith.constant 0 : index
      %109 = vector.load %arg6[%c0_81, %c0_82, %c4_83, %c0_84, %c0_85] : memref<1x1x7x8x128xf32, #tpu.memory_space<vmem>>, vector<1x1x1x8x128xf32>
      %110 = vector.shape_cast %109 : vector<1x1x1x8x128xf32> to vector<8x128xf32>
      %111 = vector.shape_cast %108 : vector<8x128xf32> to vector<1x1x1x8x128xf32>
      tpu.vector_store %arg6[%c0_81, %c0_82, %c4_83, %c0_84, %c0_85], %111 {strides = array<i32>} : memref<1x1x7x8x128xf32, #tpu.memory_space<vmem>>, vector<1x1x1x8x128xf32>,
      %c0_86 = arith.constant 0 : index
      %c0_87 = arith.constant 0 : index
      %c5 = arith.constant 5 : index
      %c0_88 = arith.constant 0 : index
      %c0_89 = arith.constant 0 : index
      %112 = vector.load %arg6[%c0_86, %c0_87, %c5, %c0_88, %c0_89] : memref<1x1x7x8x128xf32, #tpu.memory_space<vmem>>, vector<1x1x1x8x128xf32>
      %113 = vector.shape_cast %112 : vector<1x1x1x8x128xf32> to vector<8x128xf32>
      %114 = arith.addf %113, %73 : vector<8x128xf32>
      %c0_90 = arith.constant 0 : index
      %c0_91 = arith.constant 0 : index
      %c5_92 = arith.constant 5 : index
      %c0_93 = arith.constant 0 : index
      %c0_94 = arith.constant 0 : index
      %115 = vector.load %arg6[%c0_90, %c0_91, %c5_92, %c0_93, %c0_94] : memref<1x1x7x8x128xf32, #tpu.memory_space<vmem>>, vector<1x1x1x8x128xf32>
      %116 = vector.shape_cast %115 : vector<1x1x1x8x128xf32> to vector<8x128xf32>
      %117 = vector.shape_cast %114 : vector<8x128xf32> to vector<1x1x1x8x128xf32>
      tpu.vector_store %arg6[%c0_90, %c0_91, %c5_92, %c0_93, %c0_94], %117 {strides = array<i32>} : memref<1x1x7x8x128xf32, #tpu.memory_space<vmem>>, vector<1x1x1x8x128xf32>,
      %c0_95 = arith.constant 0 : index
      %c0_96 = arith.constant 0 : index
      %c6 = arith.constant 6 : index
      %c0_97 = arith.constant 0 : index
      %c0_98 = arith.constant 0 : index
      %118 = vector.load %arg6[%c0_95, %c0_96, %c6, %c0_97, %c0_98] : memref<1x1x7x8x128xf32, #tpu.memory_space<vmem>>, vector<1x1x1x8x128xf32>
      %119 = vector.shape_cast %118 : vector<1x1x1x8x128xf32> to vector<8x128xf32>
      %120 = arith.addf %119, %75 : vector<8x128xf32>
      %c0_99 = arith.constant 0 : index
      %c0_100 = arith.constant 0 : index
      %c6_101 = arith.constant 6 : index
      %c0_102 = arith.constant 0 : index
      %c0_103 = arith.constant 0 : index
      %121 = vector.load %arg6[%c0_99, %c0_100, %c6_101, %c0_102, %c0_103] : memref<1x1x7x8x128xf32, #tpu.memory_space<vmem>>, vector<1x1x1x8x128xf32>
      %122 = vector.shape_cast %121 : vector<1x1x1x8x128xf32> to vector<8x128xf32>
      %123 = vector.shape_cast %120 : vector<8x128xf32> to vector<1x1x1x8x128xf32>
      tpu.vector_store %arg6[%c0_99, %c0_100, %c6_101, %c0_102, %c0_103], %123 {strides = array<i32>} : memref<1x1x7x8x128xf32, #tpu.memory_space<vmem>>, vector<1x1x1x8x128xf32>,
    } else {
    }
    return
  }
  func.func @transform_0(%arg0: i32, %arg1: i32, %arg2: i32) -> (i32, i32, i32, i32) {
    %c1_i32 = arith.constant 1 : i32
    %0 = arith.muli %arg1, %c1_i32 : i32
    %1 = arith.addi %0, %arg2 : i32
    %c0_i32 = arith.constant 0 : i32
    %c0_i32_0 = arith.constant 0 : i32
    %c0_i32_1 = arith.constant 0 : i32
    return %arg0, %1, %c0_i32, %c0_i32_0 : i32, i32, i32, i32
  }
  func.func @transform_1(%arg0: i32, %arg1: i32, %arg2: i32) -> (i32, i32, i32, i32) {
    %c1_i32 = arith.constant 1 : i32
    %0 = arith.muli %arg1, %c1_i32 : i32
    %1 = arith.addi %0, %arg2 : i32
    %c0_i32 = arith.constant 0 : i32
    %c0_i32_0 = arith.constant 0 : i32
    %c0_i32_1 = arith.constant 0 : i32
    return %arg0, %1, %c0_i32, %c0_i32_0 : i32, i32, i32, i32
  }
  func.func @transform_2(%arg0: i32, %arg1: i32, %arg2: i32) -> (i32, i32, i32, i32, i32) {
    %c1_i32 = arith.constant 1 : i32
    %0 = arith.muli %arg1, %c1_i32 : i32
    %1 = arith.addi %0, %arg2 : i32
    %c0_i32 = arith.constant 0 : i32
    %c0_i32_0 = arith.constant 0 : i32
    %c0_i32_1 = arith.constant 0 : i32
    %c0_i32_2 = arith.constant 0 : i32
    return %arg0, %c0_i32, %1, %c0_i32_0, %c0_i32_1 : i32, i32, i32, i32, i32
  }
  func.func @transform_3(%arg0: i32, %arg1: i32, %arg2: i32) -> (i32, i32, i32, i32, i32) {
    %c0_i32 = arith.constant 0 : i32
    %c0_i32_0 = arith.constant 0 : i32
    %c0_i32_1 = arith.constant 0 : i32
    %c0_i32_2 = arith.constant 0 : i32
    return %arg0, %arg1, %c0_i32, %c0_i32_0, %c0_i32_1 : i32, i32, i32, i32, i32
  }
}

</mosaic_0001>

<bundles_post_ra>
// kernel: tpu_custom_call.1
= control target key start
LH: loop header
LB: loop body
LE: loop exit
PB: predicated region body
PF: predicated region fallthrough
CT: control target
= control target key end

     0   :  { %s1184_s0 = inlined_call_operand.hbm [shape: f32[2,1,8,128], index: 0, kind: input, shape index: {}]   ;;  %s1185_s1 = inlined_call_operand.hbm [shape: f32[2,1,8,128], index: 1, kind: input, shape index: {}]   ;;  %s1186_s2 = inlined_call_operand.hbm [shape: f32[2,2,1,8,128], index: 2, kind: input, shape index: {}]   ;;  %s1187_s3 = inlined_call_operand.hbm [shape: f32[2,1,7,8,128], index: 3, kind: output, shape index: {}]  }
   0x1   :  { %1193 = sst [smem:[#allocation15_spill]] %s1185_s1 }
   0x2   :  { %8 = vsyncpa [#allocation3], 0 }
   0x3   :  { %10 = vsyncpa [#allocation3 + $0x1], 0 }
   0x4   :  { %11 = vsyncpa [#allocation6], 0 }
   0x5   :  { %13 = vsyncpa [#allocation6 + $0x1], 0 }
   0x6   :  { %14 = vsyncpa [#allocation4], 0 }
   0x7   :  { %16 = vsyncpa [#allocation4 + $0x1], 0  ;;  %s896_s12 = smov 0   ;;  %s898_s13 = smov 0  }
   0x8   :  { %s900_s14 = smov 0   ;;  %s902_s15 = smov 0  }
   0x9   :  { %s904_s16 = smov 0   ;;  %s906_s17 = smov 0  }
   0xa LB: > { %1194 = sst [smem:[#allocation12_spill]] %s852_s14  ;;  %s927_s18 = sadd.s32 4294967295, %s864_s17   ;;  %s864_s17 = sphi %s906_s17, %s22_s17   ;;  %s860_s16 = sphi %s904_s16, %s1219_s16   ;;  %s856_s15 = sphi %s902_s15, %s1218_s15   ;;  %s852_s14 = sphi %s900_s14, %s1214_s14   ;;  %s848_s13 = sphi %s898_s13, %s1217_s13   ;;  %s844_s12 = sphi %s896_s12, %s1216_s12  }
   0xb   : > { %s562_s19 = sadd.s32 4294967294, %s864_s17   ;;  %s41_s20 = sadd.s32 1, %s860_s16 }
   0xc   : > { %s52_s21 = sadd.s32 1, %s852_s14  ;;  %p43_p0 = scmp.ge.s32.totalorder %s41_s20, 2 }
   0xd   : > { %p59_p1 = scmp.ne.s32.totalorder %s852_s14, %s848_s13  ;;  %p60_p2 = scmp.eq.s32.totalorder %s864_s17, 0 }
   0xe   : > { %p65_p3 = scmp.ne.s32.totalorder %s848_s13, %s844_s12  ;;  %s1221_s20 = smov (%p43_p0, %s41_s20), 0 }
   0xf   : > { %1195 = sst [smem:[#allocation13_spill]] %s1221_s20  ;;  %p939_p4 = por %p60_p2, %p59_p1 }
  0x10   : > { %p66_p5 = scmp.eq.s32.totalorder %s927_s18, 0  ;;  %s47_s23 = ssub.s32 %s860_s16, %s1221_s20 }
  0x11   : > { %p151_p6 = scmp.eq.s32.totalorder %s927_s18, 1  ;;  %p50_p7 = scmp.eq.s32.totalorder %s47_s23, 0 }
  0x12   : > { %p947_p8 = por %p66_p5, %p65_p3  ;;  %p157_p10 = scmp.eq.s32.totalorder %s562_s19, 1 }
  0x13   : > { %p951_p9 = por %p151_p6, %p59_p1  ;;  %p628_p13 = scmp.lt.s32.totalorder %s864_s17, 2 }
  0x14   : > { %s1197_s24 = scalar_select %p947_p8, 1, 0 }
  0x15   : > { %s1198_s25 = scalar_select %p951_p9, 1, 0 }
  0x16   : > { %s956_s26 = scalar_select %p50_p7, %s852_s14, %s52_s21  }
  0x17   : > { %p958_p11 = por %p157_p10, %p65_p3  ;;  %s965_s28 = sand.u32 1, %s852_s14  }
  0x18   : > { %1199 = sst [smem:[#allocation14_spill]] %s956_s26  ;;  %s1188_s29 = sshll.u32 %s965_s28, 3 }
  0x19   : > { %s1200_s27 = scalar_select %p958_p11, 1, 0 }
  0x1a   : > { %s566_s30 = sshll.u32 %s860_s16, 7  ;;  %p971_p0 = pnand %p628_p13, %p939_p4 }
  0x1b   : > { %s197_s5 = sand.u32 1, %s864_s17   ;;  %s1202_s1 = sld [smem:[#allocation15_spill]] }
  0x1c   : > { %s201_s9 = scalar_lea.vmem [#allocation5], %s1188_s29  ;;  %s569_s11 = sshll.u32 %s965_s28, 4 }
  0x1d   : > { %s210_s10 = sshll.u32 %s201_s9, 4  ;;  %s988_s19 = scalar_lea.sflag [#allocation6], %s197_s5  ;;  %s986_s10 = int_to_ptr.vmem [resolvable:$true] %s210_s10 }
  0x1e   : > { %p994_p2 = pneg %p971_p0 }
  0x21   : > { %s981_s8 = scalar_lea.hbm %s1202_s1, %s566_s30  ;;  %s693_s7 = scalar_lea.hbm %s1202_s1, 256 }
  0x22   : > { %s688_s21 = scalar_lea.hbm %s981_s8, 128  ;;  %p694_p5 = scmp.lt.u32.totalorder %s981_s8, %s1202_s1 }
  0x23   : > { %p689_p1 = scmp.ne.s32.totalorder %s981_s8, %s688_s21  ;;  %p695_p6 = scmp.lt.u32.totalorder %s693_s7, %s688_s21 }
  0x24   : > { %p697_p10 = scmp.lt.u32.totalorder %s688_s21, %s981_s8 }
  0x25   : > { %p691_p3 = pnand %p994_p2, %p689_p1  ;;  %p696_p7 = por %p695_p6, %p694_p5 }
  0x27   : > { %p692_p4 = pneg %p691_p3  ;;  %p698_p13 = por %p697_p10, %p696_p7 }
  0x29   : > { %p699_p12 = pnand %p698_p13, %p692_p4 }
  0x2b   : > { %702 = shalt.err (!%p699_p12)
}
  0x2c   : > { %s703_s5 = scalar_lea.vmem %s986_s10, 128  ;;  %s866_s23 = smov [#allocation5]  }
  0x2d   : > { %p704_p1 = scmp.ne.s32.totalorder %s986_s10, %s703_s5  ;;  %s708_s6 = sshll.u32 %s866_s23, 4  ;;  %s709_s6 = int_to_ptr.vmem [resolvable:$false] %s708_s6 }
  0x2e   : > { %s710_s29 = scalar_lea.vmem %s709_s6, 256  ;;  %p711_p9 = scmp.lt.s32.totalorder %s986_s10, %s709_s6 }
  0x2f   : > { %p706_p3 = pnand %p704_p1, %p994_p2  ;;  %p712_p8 = scmp.lt.s32.totalorder %s710_s29, %s703_s5 }
  0x31   : > { %p707_p11 = pneg %p706_p3  ;;  %p713_p5 = por %p712_p8, %p711_p9 }
  0x33   : > { %p714_p6 = pnand %p713_p5, %p707_p11 }
  0x35   : > { %717 = shalt.err (!%p714_p6)
}
  0x36   : > { %620 = dma.hbm_to_vmem [thread:$0]  (!%p971_p0), %s981_s8, 128, %s986_s10, %s988_s19  }
  0x37   : > { %s221_s21 = scalar_lea.vmem [#allocation7], %s569_s11  ;;  %p572_p8 = scmp.ge.s32.totalorder %s864_s17, 1 }
  0x38   : > { %s230_s7 = sshll.u32 %s221_s21, 4  ;;  %p238_p9 = scmp.lt.s32.totalorder %s864_s17, 3  ;;  %s1021_s7 = int_to_ptr.vmem [resolvable:$true] %s230_s7 }
  0x39   : > { %s1033_s6 = scalar_lea.hbm %s1184_s0, %s566_s30  ;;  %s1205_s29 = sshll.u32 %s965_s28, 3 }
  0x3a   : > { %p1024_p11 = pnand %p572_p8, %p238_p9  ;;  %s181_s8 = scalar_lea.vmem [#allocation2], %s1205_s29 }
  0x3b   : > { %s190_s10 = sshll.u32 %s181_s8, 4  ;;  %s603_s11 = sshll.u32 %s860_s16, 8  ;;  %s1038_s10 = int_to_ptr.vmem [resolvable:$true] %s190_s10 }
  0x3c   : > { %s1204_s9 = scalar_select %p1024_p11, 1, 0 }
  0x3d   : > { %s1043_s20 = scalar_lea.hbm %s1186_s2, %s603_s11  ;;  %s178_s26 = scalar_lea.sflag [#allocation3], %s965_s28 }
  0x3e   : > { %s718_s14 = scalar_lea.hbm %s1033_s6, 128  ;;  %s723_s23 = scalar_lea.hbm %s1184_s0, 256 }
  0x3f   : > { %p719_p12 = scmp.ne.s32.totalorder %s1033_s6, %s718_s14  ;;  %p724_p10 = scmp.lt.u32.totalorder %s1033_s6, %s1184_s0 }
  0x40   : > { %p725_p13 = scmp.lt.u32.totalorder %s723_s23, %s718_s14  ;;  %p727_p3 = scmp.lt.u32.totalorder %s718_s14, %s1033_s6 }
  0x41   : > { %p721_p4 = pnand %p719_p12, %p994_p2 }
  0x42   : > { %p726_p1 = por %p725_p13, %p724_p10 }
  0x43   : > { %p722_p7 = pneg %p721_p4 }
  0x44   : > { %p728_p5 = por %p727_p3, %p726_p1 }
  0x46   : > { %p729_p6 = pnand %p728_p5, %p722_p7 }
  0x48   : > { %732 = shalt.err (!%p729_p6)
}
  0x49   : > { %s733_s1 = scalar_lea.vmem %s1038_s10, 128  ;;  %s867_s28 = smov [#allocation2]  }
  0x4a   : > { %p734_p8 = scmp.ne.s32.totalorder %s1038_s10, %s733_s1  ;;  %s738_s11 = sshll.u32 %s867_s28, 4  ;;  %s739_s11 = int_to_ptr.vmem [resolvable:$false] %s738_s11 }
  0x4b   : > { %s740_s21 = scalar_lea.vmem %s739_s11, 256  ;;  %p741_p4 = scmp.lt.s32.totalorder %s1038_s10, %s739_s11 }
  0x4c   : > { %p736_p9 = pnand %p734_p8, %p994_p2  ;;  %p742_p11 = scmp.lt.s32.totalorder %s740_s21, %s733_s1 }
  0x4e   : > { %p737_p12 = pneg %p736_p9  ;;  %p743_p10 = por %p742_p11, %p741_p4 }
  0x50   : > { %p744_p13 = pnand %p743_p10, %p737_p12 }
  0x52   : > { %747 = shalt.err (!%p744_p13)
}
  0x53   : > { %617 = dma.hbm_to_vmem [thread:$0]  (!%p971_p0), %s1033_s6, 128, %s1038_s10, %s178_s26  }
  0x54   : > { %s748_s14 = scalar_lea.hbm %s1043_s20, 256  ;;  %s753_s23 = scalar_lea.hbm %s1186_s2, 512 }
  0x55   : > { %p749_p7 = scmp.ne.s32.totalorder %s1043_s20, %s748_s14  ;;  %p754_p11 = scmp.lt.u32.totalorder %s1043_s20, %s1186_s2 }
  0x56   : > { %p755_p5 = scmp.lt.u32.totalorder %s753_s23, %s748_s14  ;;  %p757_p8 = scmp.lt.u32.totalorder %s748_s14, %s1043_s20 }
  0x57   : > { %p751_p1 = pnand %p749_p7, %p994_p2 }
  0x58   : > { %p756_p6 = por %p755_p5, %p754_p11 }
  0x59   : > { %p752_p3 = pneg %p751_p1 }
  0x5a   : > { %p758_p9 = por %p757_p8, %p756_p6 }
  0x5c   : > { %p759_p12 = pnand %p758_p9, %p752_p3 }
  0x5e   : > { %762 = shalt.err (!%p759_p12)
}
  0x5f   : > { %s763_s26 = scalar_lea.vmem %s1021_s7, 256  ;;  %s868_s6 = smov [#allocation7]  }
  0x60   : > { %p764_p4 = scmp.ne.s32.totalorder %s1021_s7, %s763_s26  ;;  %s768_s10 = sshll.u32 %s868_s6, 4  ;;  %s769_s10 = int_to_ptr.vmem [resolvable:$false] %s768_s10 }
  0x61   : > { %s770_s1 = scalar_lea.vmem %s769_s10, 512  ;;  %p771_p7 = scmp.lt.s32.totalorder %s1021_s7, %s769_s10 }
  0x62   : > { %p766_p10 = pnand %p764_p4, %p994_p2  ;;  %p772_p1 = scmp.lt.s32.totalorder %s770_s1, %s763_s26 }
  0x64   : > { %p767_p13 = pneg %p766_p10  ;;  %p773_p11 = por %p772_p1, %p771_p7 }
  0x66   : > { %p774_p5 = pnand %p773_p11, %p767_p13 }
  0x68   : > { %777 = shalt.err (!%p774_p5)
}
  0x69   : > { %s869_s28 = smov 128   ;;  %s870_s11 = smov 8  }
  0x6a   : > { %623 = dma.hbm_to_vmem [thread:$0]  (!%p971_p0), %s1043_s20, 256, %s1021_s7, %s988_s19, %s869_s28, %s869_s28, %s870_s11  }
  0x6b   : > { %p1206_p2 = scmp.ne.s32.totalorder %s1204_s9, 0 }
  0x6c   : > { %s1092_s22 = sand.u32 (!%p1206_p2), 1, %s848_s13   ;;  %p1207_p3 = scmp.ne.s32.totalorder (!%p1206_p2), %s1197_s24, 0 }
  0x6d   : > { %242 = sbr.rel (%p1206_p2) target bundleno = 169 (0xa9), region = 32  ;;  %s573_s21 = sshll.u32 (!%p1206_p2), %s1092_s22, 3 }
  0x6e   : > { %s245_s14 = scalar_lea.sflag (!%p1206_p2), [#allocation3], %s1092_s22  ;;  %s248_s30 = scalar_lea.vmem (!%p1206_p2), [#allocation2], %s573_s21 }
  0x74   : > { %831 = dma.done.wait (%p1207_p3), %s245_s14, 128  }
  0x75   : > { %833 = vsyncadd (%p1207_p3), %s245_s14, 4294967168  ;;  %s253_s20 = sand.u32 1, %s927_s18   ;;  %s257_s19 = scalar_lea.vmem [#allocation5], %s573_s21 }
  0x76   : > { %s254_s4 = scalar_lea.sflag [#allocation6], %s253_s20 }
  0x77   : > { %835 = dma.done.wait (%p1207_p3), %s254_s4, 384  }
  0x78   : > { %837 = vsyncadd (%p1207_p3), %s254_s4, 4294966912  ;;  %s575_s7 = sshll.u32 %s1092_s22, 4  ;;  %s604_s9 = smul.u32 56, %s1092_s22  ;;  %v304_v0 = vld [vmem:[%s248_s30] sm:$0xff]  ;;  %v306_v1 = vld [vmem:[%s257_s19] sm:$0xff]  ;;  %vm871_vm2 = vmmov 1  }
  0x79   : > { %s266_s5 = scalar_lea.vmem [#allocation7], %s575_s7  ;;  %v307_v3 = vadd.f32 1e-09, %v304_v0  ;;  %vm308_vm0 = vweird.f32 %v306_v1  ;;  %vm310_vm1 = vcmp.gt.f32.partialorder %v306_v1, 0.0  ;;  %v872_v8 = vmov 0.0   ;;  %s605_s23 = smul.u32 896, %s856_s15 }
  0x7a   : > { %v313_v2 = vld [vmem:[%s266_s5] sm:$0xff]  ;;  %v576_v4 = vld [vmem:[%s266_s5 + $0x8] sm:$0xff]  ;;  %vm309_vm3 = vmxor %vm308_vm0, %vm871_vm2  ;;  %s1113_s18 = scalar_lea.vmem [#allocation8], %s604_s9  ;;  %s408_s6 = scalar_lea.sflag [#allocation4], %s1092_s22 }
  0x7b   : > { %v317_v5 = vadd.f32 %v576_v4, %v313_v2  ;;  %vm311_vm4 = vmand %vm309_vm3, %vm310_vm1  ;;  %v322_v6 = vmul.f32 %v307_v3, %v306_v1  ;;  %s423_s24 = sshll.u32 %s1113_s18, 4  ;;  %s1134_s26 = scalar_lea.hbm %s1187_s3, %s605_s23  ;;  %s1126_s24 = int_to_ptr.vmem [resolvable:$true] %s423_s24 }
  0x7c   : > { %s778_s10 = scalar_lea.vmem %s1126_s24, 896  ;;  %p1210_p6 = scmp.ne.s32.totalorder %s1198_s25, 0 }
  0x7d   : > { %vm318_vm5 = vcmp.gt.f32.partialorder %v317_v5, 0.0  ;;  %684 = vrcp.f32 %v322_v6  ;;  %v332_v10 = vmul.f32 0.00050251256, %v322_v6  ;;  %p779_p0 = scmp.ne.s32.totalorder %s1126_s24, %s778_s10  ;;  %s873_s15 = smov [#allocation8]  }
  0x7e   : > { %vm1107_vm6 = vmand %vm311_vm4, %vm318_vm5  ;;  %s782_s1 = sshll.u32 %s873_s15, 4  ;;  %s783_s1 = int_to_ptr.vmem [resolvable:$false] %s782_s1 }
  0x7f   : > { %v577_v9 = vsel %vm1107_vm6, 1.0, %v872_v8  ;;  %p780_p8 = pnand %p779_p0, %p1210_p6  ;;  %s784_s28 = scalar_lea.vmem %s783_s1, 1792 }
  0x80   : > { %363 = vst [vmem:[%s1113_s18] sm:$0xff] %v577_v9  ;;  %p785_p12 = scmp.lt.s32.totalorder %s1126_s24, %s783_s1  ;;  %p786_p4 = scmp.lt.s32.totalorder %s784_s28, %s778_s10 }
  0x81   : > { %p781_p9 = pneg %p780_p8 }
  0x82   : > { %p787_p10 = por %p786_p4, %p785_p12 }
  0x84   : > { %p788_p13 = pnand %p787_p10, %p781_p9 }
  0x87   : > { %v685_v11 = vpop.eup %684 }
  0x88   : > { %v325_v12 = vmul.f32 1990.0, %v685_v11 }
  0x8a   : > { %v578_v13 = vadd.f32 -1.0, %v325_v12  ;;  %686 = vlog2.f32 %v325_v12  ;;  %v333_v14 = vmax.f32 %v325_v12, %v332_v10 }
  0x8c   : > { %v327_v15 = vand.u32 2147483647, %v578_v13  ;;  %v334_v16 = vsel %vm1107_vm6, %v333_v14, inf }
  0x8d   : > { %vm335_vm7 = vcmp.lt.f32.partialorder %v334_v16, 1.25  ;;  %vm338_vm8 = vcmp.lt.f32.partialorder %v334_v16, 1.5625  ;;  %vm341_vm9 = vcmp.lt.f32.partialorder %v334_v16, 1.953125 }
  0x8e   : > { %v328_v17 = vsel %vm1107_vm6, %v327_v15, 0.0  ;;  %v579_v18 = vsel %vm335_vm7, 1.0, %v872_v8  ;;  %v580_v19 = vsel %vm338_vm8, 1.0, %v872_v8  ;;  %v581_v20 = vsel %vm341_vm9, 1.0, %v872_v8 }
  0x8f   : > { %582 = vst [vmem:[%s1113_s18 + $0x8] sm:$0xff] %v328_v17  ;;  %585 = vst [vmem:[%s1113_s18 + $0x20] sm:$0xff] %v579_v18 }
  0x90   : > { %586 = vst [vmem:[%s1113_s18 + $0x28] sm:$0xff] %v580_v19  ;;  %587 = vst [vmem:[%s1113_s18 + $0x30] sm:$0xff] %v581_v20 }
  0x94   : > { %v687_v21 = vpop.eup %686 }
  0x95   : > { %v330_v22 = vmul.f32 0.6931472, %v687_v21 }
  0x97   : > { %v331_v23 = vsel %vm1107_vm6, %v330_v22, 0.0 }
  0x98   : > { %v350_v24 = vmul.f32 %v331_v23, %v331_v23  ;;  %583 = vst [vmem:[%s1113_s18 + $0x10] sm:$0xff] %v331_v23 }
  0x9a   : > { %584 = vst [vmem:[%s1113_s18 + $0x18] sm:$0xff] %v350_v24 }
  0x9b   : > { %791 = shalt.err (!%p788_p13)
}
  0x9c   : > { %s792_s11 = scalar_lea.hbm %s1134_s26, 896  ;;  %s796_s30 = scalar_lea.hbm %s1187_s3, 1792 }
  0x9d   : > { %p793_p7 = scmp.ne.s32.totalorder %s1134_s26, %s792_s11  ;;  %p797_p5 = scmp.lt.u32.totalorder %s1134_s26, %s1187_s3 }
  0x9e   : > { %p798_p2 = scmp.lt.u32.totalorder %s796_s30, %s792_s11  ;;  %p800_p0 = scmp.lt.u32.totalorder %s792_s11, %s1134_s26 }
  0x9f   : > { %p794_p1 = pnand %p793_p7, %p1210_p6 }
  0xa0   : > { %p799_p3 = por %p798_p2, %p797_p5 }
  0xa1   : > { %p795_p11 = pneg %p794_p1 }
  0xa2   : > { %p801_p8 = por %p800_p0, %p799_p3 }
  0xa4   : > { %p802_p9 = pnand %p801_p8, %p795_p11 }
  0xa6   : > { %805 = shalt.err (!%p802_p9)
}
  0xa7   : > { %s874_s19 = smov 128   ;;  %s875_s7 = smov 8  }
  0xa8   : > { %612 = dma.vmem_to_hbm [thread:$0]  (%p1210_p6), %s1126_s24, 896, %s1134_s26, %s408_s6, %s874_s19, %s874_s19, %s875_s7  }
  0xa9 PF: > { %s438_s9 = sand.u32 1, %s844_s12   ;;  %p1211_p12 = scmp.ne.s32.totalorder %s1200_s27, 0 }
  0xaa   : > { %p1212_p4 = scmp.ge.s32.totalorder %s864_s17, 2  ;;  %s439_s5 = scalar_lea.sflag [#allocation4], %s438_s9 }
  0xac   : > { %p625_p10 = pnand %p1212_p4, %p1211_p12 }
  0xae   : > { %839 = dma.done.wait (!%p625_p10), %s439_s5, 896  }
  0xaf   : > { %841 = vsyncadd (!%p625_p10), %s439_s5, 4294966400  ;;  %s22_s17 = sadd.s32 1, %s864_s17   ;;  %s1213_s18 = sld [smem:[#allocation12_spill]] }
  0xb0   : > { %p19_p13 = scmp.ge.s32.totalorder %s22_s17, 4   ;;  %s1214_s14 = sld [smem:[#allocation14_spill]] }
  0xb1   : > { %s1215_s25 = sld [smem:[#allocation13_spill]]  ;;  %s1216_s12 = smov %s848_s13 }
  0xb2   : > { %s1218_s15 = smov %s860_s16  ;;  %21 = sbr.rel (!%p19_p13) target bundleno = 10 (0xa), region = 125 }
  0xb5   : > { %s1217_s13 = smov %s1213_s18 }
  0xb7   : > { %s1219_s16 = smov %s1215_s25 }
  0xb9   :  { %444 = vsyncpa [#allocation3], 1 }
  0xba   :  { %446 = vsyncpa [#allocation3 + $0x1], 1 }
  0xbb   :  { %447 = vsyncpa [#allocation6], 1 }
  0xbc   :  { %449 = vsyncpa [#allocation6 + $0x1], 1 }
  0xbd   :  { %450 = vsyncpa [#allocation4], 1 }
  0xbe   :  { %452 = vsyncpa [#allocation4 + $0x1], 1 }

</bundles_post_ra>
